<compile_context>
chip_gen: v6e
topology: v6e:2x2x1
jax: 0.10.0
libtpu: 0.0.40
codegen_flags: <defaults>
</compile_context>

<pallas_src>
import numpy as np
import jax
import jax.numpy as jnp
from jax.experimental import pallas as pl
from jax.experimental.pallas import tpu as pltpu


# -----------------------------------------------------------------------------
# Kernel
# -----------------------------------------------------------------------------
def _classification_kernel(x_ref, wf_ref, w1_ref, w2_ref, b2_ref, o_ref):
    # x:  (B, SIN_PAD)  bf16, last real column is the ones column (bias carrier)
    # Wf: (SIN_PAD, NPAD) bf16  block-diagonal freq weights + folded bf + ones carry
    # W1: (NPAD, HPAD)  bf16  firstLinear + folded b1
    # W2: (HPAD, CPAD)  bf16  diag(gamma) @ finalLinear.weight
    # b2: (1, CPAD)     f32   beta @ finalLinear.weight + finalLinear.bias
    mxu_dtype = wf_ref.dtype
    x = x_ref[...]

    # per-frequency linears fused as one block-diagonal matmul (== concat of outputs)
    emb = jnp.dot(x, wf_ref[...], preferred_element_type=jnp.float32)

    # firstLinear (+ folded bias via carried ones column) + LeakyReLU(0.01)
    h = jnp.dot(emb.astype(mxu_dtype), w1_ref[...],
                preferred_element_type=jnp.float32)
    h = jnp.maximum(h, jnp.float32(0.01) * h)

    # BatchNorm1d, training-mode batch statistics (biased variance), eps = 1e-5.
    # Padded hidden columns are identically zero -> mean = var = 0 -> normalised to 0.
    mean = jnp.mean(h, axis=0, keepdims=True)
    var = jnp.mean(jnp.square(h - mean), axis=0, keepdims=True)
    hn = (h - mean) * jax.lax.rsqrt(var + jnp.float32(1e-5))

    # finalLinear with gamma folded into W2 and (beta @ W2 + b2) as the bias
    o_ref[...] = (jnp.dot(hn.astype(mxu_dtype), w2_ref[...],
                          preferred_element_type=jnp.float32)
                  + b2_ref[...])


# -----------------------------------------------------------------------------
# Wrapper
# -----------------------------------------------------------------------------
def classification_forward(data_list, params):
    """data_list: per-frequency inputs (B, in_feat_i) for active frequencies only."""
    Wf = params["Wf"]
    B = data_list[0].shape[0]
    sum_in = params["sum_in"]
    sin_pad = Wf.shape[0]
    cpad = params["W2"].shape[1]
    num_classes = params["num_classes"]
    dt = Wf.dtype

    # Single fused concat building the padded, bias-augmented input:
    #   [ data_0 | ... | data_k | 1 | zero-pad to SIN_PAD ]
    pieces = [d.astype(dt) for d in data_list] + [jnp.ones((B, 1), dt)]
    pad = sin_pad - sum_in - 1
    if pad > 0:
        pieces.append(jnp.zeros((B, pad), dt))
    x = jnp.concatenate(pieces, axis=-1)

    vmem = pl.BlockSpec(memory_space=pltpu.MemorySpace.VMEM)
    out = pl.pallas_call(
        _classification_kernel,
        out_shape=jax.ShapeDtypeStruct((B, cpad), jnp.float32),
        in_specs=[vmem] * 5,
        out_specs=vmem,
    )(x, Wf, params["W1"], params["W2"], params["b2"])

    out = out[:, :num_classes]
    # torch .squeeze(-1) only drops the dim if it is size 1
    if num_classes == 1:
        out = jnp.squeeze(out, axis=-1)
    return out


# -----------------------------------------------------------------------------
# Parameter construction (PyTorch-style init, folded/padded for the kernel)
# -----------------------------------------------------------------------------
def _round_up(n, m):
    return (n + m - 1) // m * m


def _init_linear(key, fan_in, fan_out):
    # nn.Linear default init: U(-1/sqrt(fan_in), 1/sqrt(fan_in))
    kw, kb = jax.random.split(key)
    bound = 1.0 / np.sqrt(fan_in)
    w = np.asarray(jax.random.uniform(kw, (fan_in, fan_out), jnp.float32, -bound, bound))
    b = np.asarray(jax.random.uniform(kb, (fan_out,), jnp.float32, -bound, bound))
    return w, b


def build_params(key, in_feats, nodes_per_freq, hidden, num_classes,
                 mxu_dtype=jnp.bfloat16):
    """in_feats[i] / nodes_per_freq[i] describe the i-th *active* frequency model."""
    sum_in = sum(in_feats)
    sum_nodes = sum(nodes_per_freq)
    sin_pad = _round_up(sum_in + 1, 128)      # + ones column
    npad = _round_up(sum_nodes + 1, 128)      # + carried ones column
    hpad = _round_up(hidden, 128)
    cpad = _round_up(max(num_classes, 1), 128)

    keys = jax.random.split(key, len(in_feats) + 2)

    # per-frequency linears folded into one block-diagonal weight; bf in the ones row
    Wf = np.zeros((sin_pad, npad), np.float32)
    freq_raw = []
    r0, c0 = 0, 0
    for i, (fi, ni) in enumerate(zip(in_feats, nodes_per_freq)):
        w, b = _init_linear(keys[i], fi, ni)
        freq_raw.append((jnp.asarray(w), jnp.asarray(b)))
        Wf[r0:r0 + fi, c0:c0 + ni] = w
        Wf[sum_in, c0:c0 + ni] = b            # bias row, hit by x's ones column
        r0 += fi
        c0 += ni
    Wf[sum_in, sum_nodes] = 1.0               # carry the ones column into emb

    W1_raw, b1_raw = _init_linear(keys[-2], sum_nodes, hidden)
    W1 = np.zeros((npad, hpad), np.float32)
    W1[:sum_nodes, :hidden] = W1_raw
    W1[sum_nodes, :hidden] = b1_raw           # folded firstLinear bias

    gamma = np.ones((hidden,), np.float32)    # BatchNorm1d affine init
    beta = np.zeros((hidden,), np.float32)

    W2_raw, b2_raw = _init_linear(keys[-1], hidden, num_classes)
    W2 = np.zeros((hpad, cpad), np.float32)
    W2[:hidden, :num_classes] = gamma[:, None] * W2_raw     # gamma folded into W2
    b2 = np.zeros((1, cpad), np.float32)
    b2[0, :num_classes] = beta @ W2_raw + b2_raw            # beta folded into bias

    return {
        "Wf": jnp.asarray(Wf, mxu_dtype),
        "W1": jnp.asarray(W1, mxu_dtype),
        "W2": jnp.asarray(W2, mxu_dtype),
        "b2": jnp.asarray(b2, jnp.float32),
        "sum_in": sum_in,
        "num_classes": num_classes,
        # raw (unfolded, f32) params for the pure-JAX reference check
        "_raw": {
            "freq": freq_raw,
            "W1": jnp.asarray(W1_raw), "b1": jnp.asarray(b1_raw),
            "gamma": jnp.asarray(gamma), "beta": jnp.asarray(beta),
            "W2": jnp.asarray(W2_raw), "b2": jnp.asarray(b2_raw),
        },
    }


# -----------------------------------------------------------------------------
# Pure-JAX reference (mirrors the PyTorch forward, all f32)
# -----------------------------------------------------------------------------
def _reference_forward(data_list, raw):
    outs = [d @ w + b for d, (w, b) in zip(data_list, raw["freq"])]
    cont = jnp.concatenate(outs, axis=-1)
    h = cont @ raw["W1"] + raw["b1"]
    h = jnp.where(h > 0, h, 0.01 * h)                         # LeakyReLU(0.01)
    mean = h.mean(0, keepdims=True)
    var = ((h - mean) ** 2).mean(0, keepdims=True)            # biased (training) var
    hn = (h - mean) / jnp.sqrt(var + 1e-5)
    hn = hn * raw["gamma"] + raw["beta"]
    out = hn @ raw["W2"] + raw["b2"]
    if out.shape[-1] == 1:
        out = jnp.squeeze(out, axis=-1)
    return out


# -----------------------------------------------------------------------------
# Demo
# -----------------------------------------------------------------------------
if __name__ == "__main__":
    key = jax.random.PRNGKey(0)

    # Synthetic model config (mirrors trained_model attributes):
    #   numfreqs = 3, nodes_per_freq = [8, 0, 16] -> freq 1 is skipped, modelindx = id.
    B = 8
    numfreqs = 3
    nodes_per_freq = [8, 0, 16]
    in_feats_all = [12, 6, 10]
    hidden = 32
    num_classes = 4

    active = [i for i in range(numfreqs) if nodes_per_freq[i] != 0]
    act_in = [in_feats_all[i] for i in active]
    act_nodes = [nodes_per_freq[i] for i in active]

    kp, *kd = jax.random.split(key, 1 + numfreqs)
    params = build_params(kp, act_in, act_nodes, hidden, num_classes)

    data = [jax.random.normal(kd[i], (B, in_feats_all[i]), jnp.float32)
            for i in range(numfreqs)]
    data_active = [data[i] for i in active]

    out = classification_forward(data_active, params)
    jax.block_until_ready(out)
    assert out.shape == (B, num_classes)

    # correctness vs. pure-JAX f32 reference (tolerance covers bf16 MXU inputs)
    ref = _reference_forward(data_active, params["_raw"])
    err = float(jnp.max(jnp.abs(out - ref)))
    bound = 0.1 + 0.1 * float(jnp.max(jnp.abs(ref)))
    assert err <= bound, f"max abs err {err} > {bound}"

    print("KERNEL_OK")
</pallas_src>

<mosaic_0001>
module attributes {stable_mosaic.version = 11 : i64} {
  func.func @_classification_kernel(%arg0: memref<8x128xbf16, #tpu.memory_space<vmem>>, %arg1: memref<128x128xbf16, #tpu.memory_space<vmem>>, %arg2: memref<128x128xbf16, #tpu.memory_space<vmem>>, %arg3: memref<128x128xbf16, #tpu.memory_space<vmem>>, %arg4: memref<1x128xf32, #tpu.memory_space<vmem>>, %arg5: memref<8x128xf32, #tpu.memory_space<vmem>>) attributes {dimension_semantics = [], scalar_prefetch = 0 : i64, scratch_operands = 0 : i64, tpu.core_type = #tpu.core_type<tc>} {
    %c0 = arith.constant 0 : index
    %c0_0 = arith.constant 0 : index
    %0 = vector.load %arg0[%c0, %c0_0] : memref<8x128xbf16, #tpu.memory_space<vmem>>, vector<8x128xbf16>
    %c0_1 = arith.constant 0 : index
    %c0_2 = arith.constant 0 : index
    %1 = vector.load %arg1[%c0_1, %c0_2] : memref<128x128xbf16, #tpu.memory_space<vmem>>, vector<128x128xbf16>
    %cst = arith.constant dense<0.000000e+00> : vector<8x128xf32>
    %2 = tpu.matmul %0, %1, %cst {dimension_numbers = #tpu.dot_dimension_numbers<[1], [0], [0], [1], [0, 0, 1, 1], [], []>} : vector<8x128xbf16>, vector<128x128xbf16>, vector<8x128xf32> -> vector<8x128xf32>
    %3 = arith.truncf %2 : vector<8x128xf32> to vector<8x128xbf16>
    %c0_3 = arith.constant 0 : index
    %c0_4 = arith.constant 0 : index
    %4 = vector.load %arg2[%c0_3, %c0_4] : memref<128x128xbf16, #tpu.memory_space<vmem>>, vector<128x128xbf16>
    %cst_5 = arith.constant dense<0.000000e+00> : vector<8x128xf32>
    %5 = tpu.matmul %3, %4, %cst_5 {dimension_numbers = #tpu.dot_dimension_numbers<[1], [0], [0], [1], [0, 0, 1, 1], [], []>} : vector<8x128xbf16>, vector<128x128xbf16>, vector<8x128xf32> -> vector<8x128xf32>
    %cst_6 = arith.constant 0.00999999977 : f32
    %6 = vector.broadcast %cst_6 : f32 to vector<8x128xf32>
    %7 = arith.mulf %6, %5 : vector<8x128xf32>
    %8 = arith.maximumf %5, %7 : vector<8x128xf32>
    %cst_7 = arith.constant dense<0.000000e+00> : vector<128xf32>
    %9 = vector.multi_reduction <add>, %8, %cst_7 [0] : vector<8x128xf32> to vector<128xf32>
    %10 = vector.shape_cast %9 : vector<128xf32> to vector<1x128xf32>
    %cst_8 = arith.constant 8.000000e+00 : f32
    %11 = vector.broadcast %cst_8 : f32 to vector<1x128xf32>
    %12 = arith.divf %10, %11 : vector<1x128xf32>
    %13 = vector.broadcast %12 : vector<1x128xf32> to vector<8x128xf32>
    %14 = arith.subf %8, %13 : vector<8x128xf32>
    %15 = arith.mulf %14, %14 : vector<8x128xf32>
    %cst_9 = arith.constant dense<0.000000e+00> : vector<128xf32>
    %16 = vector.multi_reduction <add>, %15, %cst_9 [0] : vector<8x128xf32> to vector<128xf32>
    %17 = vector.shape_cast %16 : vector<128xf32> to vector<1x128xf32>
    %cst_10 = arith.constant 8.000000e+00 : f32
    %18 = vector.broadcast %cst_10 : f32 to vector<1x128xf32>
    %19 = arith.divf %17, %18 : vector<1x128xf32>
    %20 = vector.broadcast %12 : vector<1x128xf32> to vector<8x128xf32>
    %21 = arith.subf %8, %20 : vector<8x128xf32>
    %cst_11 = arith.constant 9.99999974E-6 : f32
    %22 = vector.broadcast %cst_11 : f32 to vector<1x128xf32>
    %23 = arith.addf %19, %22 : vector<1x128xf32>
    %24 = math.rsqrt %23 : vector<1x128xf32>
    %25 = vector.broadcast %24 : vector<1x128xf32> to vector<8x128xf32>
    %26 = arith.mulf %21, %25 : vector<8x128xf32>
    %27 = arith.truncf %26 : vector<8x128xf32> to vector<8x128xbf16>
    %c0_12 = arith.constant 0 : index
    %c0_13 = arith.constant 0 : index
    %28 = vector.load %arg3[%c0_12, %c0_13] : memref<128x128xbf16, #tpu.memory_space<vmem>>, vector<128x128xbf16>
    %cst_14 = arith.constant dense<0.000000e+00> : vector<8x128xf32>
    %29 = tpu.matmul %27, %28, %cst_14 {dimension_numbers = #tpu.dot_dimension_numbers<[1], [0], [0], [1], [0, 0, 1, 1], [], []>} : vector<8x128xbf16>, vector<128x128xbf16>, vector<8x128xf32> -> vector<8x128xf32>
    %c0_15 = arith.constant 0 : index
    %c0_16 = arith.constant 0 : index
    %30 = vector.load %arg4[%c0_15, %c0_16] : memref<1x128xf32, #tpu.memory_space<vmem>>, vector<1x128xf32>
    %31 = vector.broadcast %30 : vector<1x128xf32> to vector<8x128xf32>
    %32 = arith.addf %29, %31 : vector<8x128xf32>
    %c0_17 = arith.constant 0 : index
    %c0_18 = arith.constant 0 : index
    %33 = vector.load %arg5[%c0_17, %c0_18] : memref<8x128xf32, #tpu.memory_space<vmem>>, vector<8x128xf32>
    tpu.vector_store %arg5[%c0_17, %c0_18], %32 {strides = array<i32>} : memref<8x128xf32, #tpu.memory_space<vmem>>, vector<8x128xf32>,
    return
  }
}

</mosaic_0001>

<bundles_post_ra>
// kernel: tpu_custom_call.1
= control target key start
LH: loop header
LB: loop body
LE: loop exit
PB: predicated region body
PF: predicated region fallthrough
CT: control target
= control target key end

     0   :  { %10 = vsyncpa [#allocation3], 0  ;;  %s788_s0 = inlined_call_operand.hbm [shape: bf16[8,128], index: 0, kind: input, shape index: {}]   ;;  %s789_s1 = inlined_call_operand.hbm [shape: bf16[128,128], index: 1, kind: input, shape index: {}]   ;;  %s790_s2 = inlined_call_operand.hbm [shape: bf16[128,128], index: 2, kind: input, shape index: {}]   ;;  %s791_s3 = inlined_call_operand.hbm [shape: bf16[128,128], index: 3, kind: input, shape index: {}]   ;;  %s792_s4 = inlined_call_operand.vmem [shape: f32[1,128], index: 4, kind: input, shape index: {}]   ;;  %s793_s5 = inlined_call_operand.hbm [shape: f32[8,128], index: 5, kind: output, shape index: {}]  }
   0x1   :  { %11 = vsyncpa [#allocation6], 0 }
   0x2   :  { %12 = vsyncpa [#allocation9], 0 }
   0x3   :  { %13 = vsyncpa [#allocation4], 0  ;;  %s692_s18 = smov [#allocation5]  }
   0x4   :  { %s29_s19 = sshll.u32 %s692_s18, 4  ;;  %s30_s19 = int_to_ptr.vmem [resolvable:$true] %s29_s19 }
   0x5   :  { %s592_s20 = scalar_lea.vmem %s30_s19, 1024  ;;  %p597_p1 = scmp.lt.s32.totalorder %s30_s19, %s30_s19 }
   0x6   :  { %p593_p0 = scmp.ne.s32.totalorder %s30_s19, %s592_s20  ;;  %p598_p2 = scmp.lt.s32.totalorder %s592_s20, %s592_s20 }
   0x8   :  { %p599_p3 = por %p598_p2, %p597_p1 }
   0xa   :  { %p600_p4 = pnand %p599_p3, %p593_p0 }
   0xc   :  { %603 = shalt.err (!%p600_p4)
}
   0xd   :  { %s693_s21 = smov 64   ;;  %s694_s22 = smov 4  }
   0xe   :  { %35 = dma.hbm_to_vmem [thread:$0]  %s789_s1, 1024, %s30_s19, [#allocation6], %s693_s21, %s693_s21, %s694_s22  }
   0xf   :  { %s695_s25 = smov [#allocation2]   ;;  %s696_s27 = smov [#allocation7]  }
  0x10   :  { %s20_s26 = sshll.u32 %s695_s25, 4  ;;  %s41_s28 = sshll.u32 %s696_s27, 4  ;;  %s21_s26 = int_to_ptr.vmem [resolvable:$true] %s20_s26  ;;  %s42_s28 = int_to_ptr.vmem [resolvable:$true] %s41_s28 }
  0x11   :  { %s612_s29 = scalar_lea.vmem %s21_s26, 64  ;;  %p617_p6 = scmp.lt.s32.totalorder %s21_s26, %s21_s26 }
  0x12   :  { %p613_p5 = scmp.ne.s32.totalorder %s21_s26, %s612_s29  ;;  %p618_p7 = scmp.lt.s32.totalorder %s612_s29, %s612_s29 }
  0x14   :  { %p619_p8 = por %p618_p7, %p617_p6 }
  0x16   :  { %p620_p9 = pnand %p619_p8, %p613_p5 }
  0x18   :  { %623 = shalt.err (!%p620_p9)
}
  0x19   :  { %23 = dma.hbm_to_vmem [thread:$0]  %s788_s0, 64, %s21_s26, [#allocation3]  }
  0x1a   :  { %s632_s7 = scalar_lea.vmem %s42_s28, 1024  ;;  %p637_p11 = scmp.lt.s32.totalorder %s42_s28, %s42_s28 }
  0x1b   :  { %p633_p10 = scmp.ne.s32.totalorder %s42_s28, %s632_s7  ;;  %p638_p12 = scmp.lt.s32.totalorder %s632_s7, %s632_s7 }
  0x1d   :  { %p639_p13 = por %p638_p12, %p637_p11 }
  0x1f   :  { %p640_p0 = pnand %p639_p13, %p633_p10 }
  0x21   :  { %643 = shalt.err (!%p640_p0)
}
  0x22   :  { %47 = dma.hbm_to_vmem [thread:$0]  %s790_s2, 1024, %s42_s28, [#allocation6], %s693_s21, %s693_s21, %s694_s22  }
  0x23   :  { %s697_s9 = smov [#allocation8]  }
  0x24   :  { %s53_s10 = sshll.u32 %s697_s9, 4  ;;  %s54_s10 = int_to_ptr.vmem [resolvable:$true] %s53_s10 }
  0x25   :  { %s652_s11 = scalar_lea.vmem %s54_s10, 1024  ;;  %p657_p2 = scmp.lt.s32.totalorder %s54_s10, %s54_s10 }
  0x26   :  { %p653_p1 = scmp.ne.s32.totalorder %s54_s10, %s652_s11  ;;  %p658_p3 = scmp.lt.s32.totalorder %s652_s11, %s652_s11 }
  0x28   :  { %p659_p4 = por %p658_p3, %p657_p2 }
  0x2a   :  { %p660_p5 = pnand %p659_p4, %p653_p1 }
  0x2c   :  { %663 = shalt.err (!%p660_p5)
}
  0x2d   :  { %59 = dma.hbm_to_vmem [thread:$0]  %s791_s3, 1024, %s54_s10, [#allocation9], %s693_s21, %s693_s21, %s694_s22  }
  0x2e   :  { %684 = dma.done.wait [#allocation3], 64  }
  0x2f   :  { %685 = vsyncadd [#allocation3], 4294967232 }
  0x30   :  { %686 = dma.done.wait [#allocation6], 2048  }
  0x31   :  { %687 = vsyncadd [#allocation6], 4294965248 }
  0x32   :  { %688 = dma.done.wait [#allocation9], 1024  }
  0x33   :  { %689 = vsyncadd [#allocation9], 4294966272  ;;  %v698_v0 = vmov 0.0   ;;  %vm699_vm0 = vmmov 0   ;;  %v558_v1 = vld [vmem:[#allocation5 + $0x38] sm:$0xff]   ;;  %v559_v2 = vld [vmem:[#allocation5 + $0x30] sm:$0xff]  }
  0x34   :  { %489 = vmatprep.subr.bf16.mxu0 %v698_v0  ;;  %505 = vmatprep.mubr.msk.bf16.mxu0 %vm699_vm0, %v698_v0  ;;  %v560_v3 = vld [vmem:[#allocation5 + $0x28] sm:$0xff]   ;;  %v566_v4 = vld [vmem:[#allocation7 + $0x38] sm:$0xff]   ;;  %v561_v5 = vld [vmem:[#allocation5 + $0x20] sm:$0xff]   ;;  %s700_s13 = smov [#allocation10]  }
  0x35   :  { %509 = vmatprep.subr.bf16.mxu1 %v698_v0  ;;  %525 = vmatprep.mubr.msk.bf16.mxu1 %vm699_vm0, %v698_v0  ;;  %v567_v6 = vld [vmem:[#allocation7 + $0x30] sm:$0xff]   ;;  %v562_v7 = vld [vmem:[#allocation5 + $0x18] sm:$0xff]   ;;  %v568_v8 = vld [vmem:[#allocation7 + $0x28] sm:$0xff]   ;;  %s426_s14 = sshll.u32 %s700_s13, 4  ;;  %s427_s14 = int_to_ptr.vmem [resolvable:$true] %s426_s14 }
  0x36   :  { %490 = vmatpush3.bf16.msra.mxu0 %v558_v1  ;;  %510 = vmatpush3.bf16.msra.mxu1 %v566_v4  ;;  %v563_v9 = vld [vmem:[#allocation5 + $0x10] sm:$0xff]   ;;  %v569_v10 = vld [vmem:[#allocation7 + $0x20] sm:$0xff]   ;;  %v564_v11 = vld [vmem:[#allocation5 + $0x8] sm:$0xff]   ;;  %s664_s15 = scalar_lea.vmem %s427_s14, 128  ;;  %p669_p7 = scmp.lt.s32.totalorder %s427_s14, %s427_s14 }
  0x37   :  { %491 = vmatprep.subr.bf16.mxu0 %v698_v0  ;;  %511 = vmatprep.subr.bf16.mxu1 %v698_v0  ;;  %v570_v12 = vld [vmem:[#allocation7 + $0x18] sm:$0xff]   ;;  %v565_v13 = vld [vmem:[#allocation5] sm:$0xff]   ;;  %v571_v14 = vld [vmem:[#allocation7 + $0x10] sm:$0xff]   ;;  %p665_p6 = scmp.ne.s32.totalorder %s427_s14, %s664_s15  ;;  %p670_p8 = scmp.lt.s32.totalorder %s664_s15, %s664_s15 }
  0x38   :  { %v75_v15 = vld [vmem:[#allocation2] sm:$0xf]  ;;  %v572_v16 = vld [vmem:[#allocation7 + $0x8] sm:$0xff]   ;;  %v573_v17 = vld [vmem:[#allocation7] sm:$0xff]  }
  0x39   :  { %v574_v23 = vld [vmem:[#allocation8 + $0x38] sm:$0xff]   ;;  %v575_v24 = vld [vmem:[#allocation8 + $0x30] sm:$0xff]   ;;  %v576_v25 = vld [vmem:[#allocation8 + $0x28] sm:$0xff]   ;;  %p671_p9 = por %p670_p8, %p669_p7 }
  0x3a   :  { %492 = vmatpush3.bf16.msra.mxu0 %v559_v2  ;;  %512 = vmatpush3.bf16.msra.mxu1 %v567_v6  ;;  %v577_v26 = vld [vmem:[#allocation8 + $0x20] sm:$0xff]   ;;  %v578_v27 = vld [vmem:[#allocation8 + $0x18] sm:$0xff]   ;;  %v579_v28 = vld [vmem:[#allocation8 + $0x10] sm:$0xff]  }
  0x3b   :  { %493 = vmatprep.subr.bf16.mxu0 %v698_v0  ;;  %513 = vmatprep.subr.bf16.mxu1 %v698_v0  ;;  %v580_v29 = vld [vmem:[#allocation8 + $0x8] sm:$0xff]   ;;  %v581_v30 = vld [vmem:[#allocation8] sm:$0xff]   ;;  %v453_v57 = vld [vmem:[%s792_s4] ss:$0 sm:$0xff]  ;;  %p672_p10 = pnand %p671_p9, %p665_p6 }
  0x3e   :  { %494 = vmatpush3.bf16.msra.mxu0 %v560_v3  ;;  %514 = vmatpush3.bf16.msra.mxu1 %v568_v8 }
  0x3f   :  { %495 = vmatprep.subr.bf16.mxu0 %v698_v0  ;;  %515 = vmatprep.subr.bf16.mxu1 %v698_v0 }
  0x42   :  { %496 = vmatpush3.bf16.msra.mxu0 %v561_v5  ;;  %516 = vmatpush3.bf16.msra.mxu1 %v569_v10 }
  0x43   :  { %497 = vmatprep.subr.bf16.mxu0 %v698_v0  ;;  %517 = vmatprep.subr.bf16.mxu1 %v698_v0 }
  0x46   :  { %498 = vmatpush3.bf16.msra.mxu0 %v562_v7  ;;  %518 = vmatpush3.bf16.msra.mxu1 %v570_v12 }
  0x47   :  { %499 = vmatprep.subr.bf16.mxu0 %v698_v0  ;;  %519 = vmatprep.subr.bf16.mxu1 %v698_v0 }
  0x4a   :  { %500 = vmatpush3.bf16.msra.mxu0 %v563_v9  ;;  %520 = vmatpush3.bf16.msra.mxu1 %v571_v14 }
  0x4b   :  { %501 = vmatprep.subr.bf16.mxu0 %v698_v0  ;;  %521 = vmatprep.subr.bf16.mxu1 %v698_v0 }
  0x4e   :  { %502 = vmatpush3.bf16.msra.mxu0 %v564_v11  ;;  %522 = vmatpush3.bf16.msra.mxu1 %v572_v16 }
  0x4f   :  { %503 = vmatprep.subr.bf16.mxu0 %v698_v0  ;;  %523 = vmatprep.subr.bf16.mxu1 %v698_v0 }
  0x52   :  { %504 = vmatpush3.bf16.msra.mxu0 %v565_v13  ;;  %524 = vmatpush3.bf16.msra.mxu1 %v573_v17 }
  0x53   :  { %529 = vmatprep.subr.bf16.mxu0 %v698_v0 }
  0x55   :  { %506 = vmatmul.mubr.bf16.vlgmr.msra.gmra.mxu0 %v75_v15 }
  0x56   :  { %545 = vmatprep.mubr.msk.bf16.mxu0 %vm699_vm0, %v698_v0  ;;  %530 = vmatpush3.bf16.msra.mxu0 %v574_v23 }
  0x57   :  { %531 = vmatprep.subr.bf16.mxu0 %v698_v0 }
  0x5a   :  { %532 = vmatpush3.bf16.msra.mxu0 %v575_v24 }
  0x5b   :  { %533 = vmatprep.subr.bf16.mxu0 %v698_v0 }
  0x5e   :  { %534 = vmatpush3.bf16.msra.mxu0 %v576_v25 }
  0x5f   :  { %535 = vmatprep.subr.bf16.mxu0 %v698_v0 }
  0x62   :  { %536 = vmatpush3.bf16.msra.mxu0 %v577_v26 }
  0x63   :  { %537 = vmatprep.subr.bf16.mxu0 %v698_v0 }
  0x66   :  { %538 = vmatpush3.bf16.msra.mxu0 %v578_v27 }
  0x67   :  { %539 = vmatprep.subr.bf16.mxu0 %v698_v0 }
  0x6a   :  { %540 = vmatpush3.bf16.msra.mxu0 %v579_v28 }
  0x6b   :  { %541 = vmatprep.subr.bf16.mxu0 %v698_v0 }
  0x6e   :  { %542 = vmatpush3.bf16.msra.mxu0 %v580_v29 }
  0x6f   :  { %543 = vmatprep.subr.bf16.mxu0 %v698_v0 }
  0x72   :  { %544 = vmatpush3.bf16.msra.mxu0 %v581_v30 }
 0x115   :  { %v174_v18 = vpop.f32.mrf.mxu0 }
 0x116   :  { %v180_v19 = vpack.c.bf16 %v174_v18, %v174_v18 }
 0x117   :  { %v507_v20 = vpop.f32.mrf.mxu0 }
 0x118   :  { %526 = vmatmul.mubr.bf16.vlgmr.msra.gmra.mxu1 %v180_v19 }
 0x119   :  { %v177_v21 = vpop.f32.mrf.mxu0 }
 0x11b   :  { %v508_v22 = vpop.f32.mrf.mxu0 }
 0x1d8   :  { %v279_v31 = vpop.f32.mrf.mxu1 }
 0x1d9   :  { %v285_v32 = vmul.f32 0.01, %v279_v31 }
 0x1da   :  { %v527_v33 = vpop.f32.mrf.mxu1 }
 0x1db   :  { %v286_v34 = vmax.f32 %v279_v31, %v285_v32 }
 0x1dc   :  { %v282_v35 = vpop.f32.mrf.mxu1 }
 0x1dd   :  { %v287_v36 = vrot.slane %v286_v34, 4 }
 0x1de   :  { %v528_v37 = vpop.f32.mrf.mxu1 }
 0x1df   :  { %v288_v38 = vadd.f32 %v287_v36, %v286_v34 }
 0x1e1   :  { %v289_v39 = vrot.slane %v288_v38, 2 }
 0x1e3   :  { %v290_v40 = vadd.f32 %v289_v39, %v288_v38 }
 0x1e5   :  { %v291_v41 = vrot.slane %v290_v40, 1 }
 0x1e7   :  { %v292_v42 = vadd.f32 %v291_v41, %v290_v40 }
 0x1e9   :  { %v294_v43 = vmul.f32 0.125, %v292_v42 }
 0x1eb   :  { %v295_v44 = vsub.f32 %v286_v34, %v294_v43 }
 0x1ed   :  { %v296_v45 = vmul.f32 %v295_v44, %v295_v44 }
 0x1ef   :  { %v297_v46 = vrot.slane %v296_v45, 4 }
 0x1f1   :  { %v298_v47 = vadd.f32 %v297_v46, %v296_v45 }
 0x1f3   :  { %v299_v48 = vrot.slane %v298_v47, 2 }
 0x1f5   :  { %v300_v49 = vadd.f32 %v299_v48, %v298_v47 }
 0x1f7   :  { %v301_v50 = vrot.slane %v300_v49, 1 }
 0x1f9   :  { %v302_v51 = vadd.f32 %v301_v50, %v300_v49 }
 0x1fb   :  { %v303_v52 = vmul.f32 0.125, %v302_v51 }
 0x1fd   :  { %v304_v53 = vadd.f32 1e-05, %v303_v52 }
 0x1ff   :  { %582 = vrsqrt.f32 %v304_v53 }
 0x20c   :  { %v583_v54 = vpop.eup %582 }
 0x20d   :  { %v306_v55 = vmul.f32 %v583_v54, %v295_v44 }
 0x20f   :  { %v307_v56 = vpack.c.bf16 %v306_v55, %v306_v55 }
 0x211   :  { %546 = vmatmul.mubr.bf16.vlgmr.msra.gmra.mxu0 %v307_v56 }
 0x2d1   :  { %v413_v58 = vpop.f32.mrf.mxu0 }
 0x2d2   :  { %v414_v59 = vadd.f32 %v453_v57, %v413_v58 }
 0x2d3   :  { %v547_v60 = vpop.f32.mrf.mxu0 }
 0x2d4   :  { %419 = vst [vmem:[#allocation10] sm:$0xff] %v414_v59 }
 0x2d5   :  { %v416_v61 = vpop.f32.mrf.mxu0 }
 0x2d6   :  { %675 = shalt.err (!%p672_p10)
}
 0x2d7   :  { %429 = dma.vmem_to_hbm [thread:$0]  %s427_s14, 128, %s793_s5, [#allocation4]   ;;  %v548_v62 = vpop.f32.mrf.mxu0 }
 0x2d8   :  { %690 = dma.done.wait [#allocation4], 128  }
 0x2d9   :  { %691 = vsyncadd [#allocation4], 4294967168 }
 0x2da   :  { %433 = vsyncpa [#allocation3], 1 }
 0x2db   :  { %434 = vsyncpa [#allocation6], 1 }
 0x2dc   :  { %435 = vsyncpa [#allocation9], 1 }
 0x2dd   :  { %436 = vsyncpa [#allocation4], 1 }

</bundles_post_ra>
